<compile_context>
chip_gen: v7x
topology: tpu7x:2x2x1
jax: 0.10.0
libtpu: 0.0.40
codegen_flags: <defaults>
</compile_context>

<pallas_src>
import functools

import jax
import jax.numpy as jnp
from jax import lax
from jax.experimental import pallas as pl
from jax.experimental.pallas import tpu as pltpu


def _round_up(n, m):
    return ((n + m - 1) // m) * m


def _kqv_layout(kq_dim, v_dim):
    """Column layout of the fused K|Q|V projection weight.

    If everything fits in one 128-lane slab, pack tightly (single MXU output tile, tiny
    intermediate); otherwise fall back to 128-lane-aligned per-component segments so the
    in-kernel splits stay lane-aligned at real head dims (64-128).
    """
    if 2 * kq_dim + v_dim <= 128:
        off_k, off_q, off_v = 0, kq_dim, 2 * kq_dim
        width = 128
    else:
        seg = _round_up(kq_dim, 128)
        off_k, off_q, off_v = 0, seg, 2 * seg
        width = 2 * seg + _round_up(v_dim, 128)
    return off_k, off_q, off_v, width


def _step_vmem_bytes(bb, s, f, dv, proj_w):
    """Rough per-grid-step VMEM footprint (bytes) used to budget block_b."""
    x_blk = 2 * bb * s * f * 2          # double-buffered bf16 input block
    out_blk = 2 * bb * s * dv * 4       # double-buffered f32 output block
    kqv = bb * s * proj_w * 4           # f32 fused-projection intermediate
    scores = 2 * bb * s * s * 4         # f32 logits + probabilities
    y = bb * s * dv * 4
    return x_blk + out_blk + kqv + scores + y


def self_attention_kernel(x_ref, w_ref, y_ref, *, off_k, off_q, off_v, kq_dim, v_dim):
    bt, s, f = x_ref.shape

    # One fused (embedding folded into K|Q|V) projection matmul over every (batch, seq)
    # row in this block. Reshape is a free layout reinterpretation since S % 8 == 0.
    x2 = x_ref[...].reshape(bt * s, f)                                        # bf16
    kqv = jnp.dot(x2, w_ref[...], preferred_element_type=jnp.float32)         # (bt*s, W) f32

    # Static lane slices of the fused projection result (live widths only).
    k = kqv[:, off_k:off_k + kq_dim].reshape(bt, s, kq_dim)
    q = kqv[:, off_q:off_q + kq_dim].reshape(bt, s, kq_dim)
    v = kqv[:, off_v:off_v + v_dim].reshape(bt, s, v_dim)

    # alpha = Q @ K^T, batched over the block's batch dim, contracting the head dim.
    # bf16 MXU operands, f32 accumulation, no materialized transpose.
    scores = lax.dot_general(
        q.astype(jnp.bfloat16), k.astype(jnp.bfloat16),
        (((2,), (2,)), ((0,), (0,))),
        preferred_element_type=jnp.float32)                                   # (bt, s, s)

    # softmax over the last axis (dim=2 in the torch code): f32 VPU math, exact divide.
    m = jnp.max(scores, axis=-1, keepdims=True)
    p = jnp.exp(scores - m)
    p = p / jnp.sum(p, axis=-1, keepdims=True)

    # y = softmax(alpha) @ V, stored at its true width (no padded writeback).
    y = lax.dot_general(
        p.astype(jnp.bfloat16), v.astype(jnp.bfloat16),
        (((2,), (1,)), ((0,), (0,))),
        preferred_element_type=jnp.float32)                                   # (bt, s, Dv)
    y_ref[...] = y.astype(y_ref.dtype)


def self_attention(x, w_embed, w_k, w_q, w_v, *, block_b=None):
    """x: (B, S, F). Weights are PyTorch-style (out, in); folded/fused here (glue)."""
    B, S, F = x.shape
    E = w_embed.shape[0]
    Dkq = w_k.shape[0]
    Dv = w_v.shape[0]
    out_dtype = x.dtype

    off_k, off_q, off_v, PW = _kqv_layout(Dkq, Dv)

    # Fold the embedding into the K|Q|V projection (x @ We^T @ Wk^T == x @ (We^T Wk^T));
    # fuse the three projections into one weight. Fold in f32, ship as bf16 (MXU peak
    # dtype on v5e/v6e/v7x; halves the weight DMA bytes).
    w_kqv = jnp.zeros((E, PW), jnp.float32)
    w_kqv = w_kqv.at[:, off_k:off_k + Dkq].set(w_k.T.astype(jnp.float32))
    w_kqv = w_kqv.at[:, off_q:off_q + Dkq].set(w_q.T.astype(jnp.float32))
    w_kqv = w_kqv.at[:, off_v:off_v + Dv].set(w_v.T.astype(jnp.float32))
    w_fused = (w_embed.T.astype(jnp.float32) @ w_kqv).astype(jnp.bfloat16)     # (F, PW)

    if block_b is None:
        # v7x has 2 TensorCores per chip: keep >= 2 "parallel" grid steps so both get
        # work. v5e/v6e are single-TC, so there the only cost of folding the whole batch
        # into one step is VMEM -- take the whole batch when we can detect that.
        try:
            kind = jax.devices()[0].device_kind.lower()
            single_tc = ("v5e" in kind) or ("v5 lite" in kind) or \
                        ("v6e" in kind) or ("v6 lite" in kind)
        except Exception:  # be conservative if detection fails
            single_tc = False
        cap = B if single_tc else max(1, B // 2)
        # Budget the per-step working set against scoped VMEM (headroom below the 32 MiB
        # limit requested further down; v7x physical VMEM is only 64 MiB).
        budget = 24 * 1024 * 1024
        block_b = 1
        for bb in range(cap, 0, -1):
            if B % bb == 0 and _step_vmem_bytes(bb, S, F, Dv, PW) <= budget:
                block_b = bb
                break
    assert B % block_b == 0, "block_b must divide batch"

    vmem_limit = max(
        32 * 1024 * 1024,
        int(1.5 * (_step_vmem_bytes(block_b, S, F, Dv, PW) + F * PW * 2)),
    )

    kernel = functools.partial(self_attention_kernel, off_k=off_k, off_q=off_q,
                               off_v=off_v, kq_dim=Dkq, v_dim=Dv)

    y = pl.pallas_call(
        kernel,
        out_shape=jax.ShapeDtypeStruct((B, S, Dv), out_dtype),
        grid_spec=pltpu.PrefetchScalarGridSpec(
            num_scalar_prefetch=0,
            grid=(B // block_b,),
            in_specs=[
                pl.BlockSpec((block_b, S, F), lambda b: (b, 0, 0)),            # x block (bf16)
                # Constant index_map -> no point double-buffering the weight: single buffer.
                pl.BlockSpec((F, PW), lambda b: (0, 0),
                             pipeline_mode=pl.Buffered(1)),
            ],
            out_specs=pl.BlockSpec((block_b, S, Dv), lambda b: (b, 0, 0)),
        ),
        compiler_params=pltpu.CompilerParams(
            dimension_semantics=("parallel",),
            vmem_limit_bytes=vmem_limit,
        ),
    )(x.astype(jnp.bfloat16), w_fused)

    return y


def self_attention_ref(x, w_embed, w_k, w_q, w_v):
    """Pure-JAX reference mirroring the PyTorch forward."""
    e = x @ w_embed.T
    k = e @ w_k.T
    q = e @ w_q.T
    v = e @ w_v.T
    alpha = jnp.einsum("bij,bkj->bik", q, k)
    alpha = jax.nn.softmax(alpha, axis=2)
    return jnp.einsum("bik,bkd->bid", alpha, v)


if __name__ == "__main__":
    # Small shapes consistent with the module's forward: x is [batch, channel, feature_dim].
    B, S = 2, 8
    input_dim, embedding_dim, kq_dim, v_dim = 32, 16, 8, 4

    key = jax.random.PRNGKey(0)
    kx, ke, kk, kq, kv = jax.random.split(key, 5)

    x = jax.random.normal(kx, (B, S, input_dim), dtype=jnp.float32)

    # Deterministic parameter init (PyTorch Linear weight layout: (out, in)).
    def init_linear(k, out_d, in_d):
        bound = 1.0 / (in_d ** 0.5)
        return jax.random.uniform(k, (out_d, in_d), jnp.float32, -bound, bound)

    w_embed = init_linear(ke, embedding_dim, input_dim)
    w_k = init_linear(kk, kq_dim, embedding_dim)
    w_q = init_linear(kq, kq_dim, embedding_dim)
    w_v = init_linear(kv, v_dim, embedding_dim)

    y = self_attention(x, w_embed, w_k, w_q, w_v)
    y = jax.block_until_ready(y)

    y_ref = self_attention_ref(x, w_embed, w_k, w_q, w_v)
    assert y.shape == (B, S, v_dim)
    # Tolerance accounts for bf16 MXU operands (f32 accumulation) vs the f32 reference.
    assert jnp.allclose(y, y_ref, atol=2e-2, rtol=2e-2), "mismatch vs reference"

    print("KERNEL_OK")
</pallas_src>

<mosaic_0001>
module attributes {stable_mosaic.version = 11 : i64} {
  func.func @self_attention_kernel(%arg0: i32, %arg1: memref<1x8x32xbf16, #tpu.memory_space<vmem>>, %arg2: memref<32x128xbf16, #tpu.memory_space<vmem>>, %arg3: memref<1x8x4xf32, #tpu.memory_space<vmem>>) attributes {dimension_semantics = [#tpu.dimension_semantics<parallel>], iteration_bounds = array<i64: 2>, scalar_prefetch = 0 : i64, scratch_operands = 0 : i64, tpu.core_type = #tpu.core_type<tc>, window_params = [{transform_indices = @transform_0, window_bounds = array<i64: 1, 8, 32>}, {pipeline_mode = #tpu.pipeline_mode<synchronous>, transform_indices = @transform_1, window_bounds = array<i64: 32, 128>}, {transform_indices = @transform_2, window_bounds = array<i64: 1, 8, 4>}]} {
    %c0 = arith.constant 0 : index
    %c0_0 = arith.constant 0 : index
    %c0_1 = arith.constant 0 : index
    %0 = vector.load %arg1[%c0, %c0_0, %c0_1] : memref<1x8x32xbf16, #tpu.memory_space<vmem>>, vector<1x8x32xbf16>
    %1 = vector.shape_cast %0 : vector<1x8x32xbf16> to vector<8x32xbf16>
    %c0_2 = arith.constant 0 : index
    %c0_3 = arith.constant 0 : index
    %2 = vector.load %arg2[%c0_2, %c0_3] : memref<32x128xbf16, #tpu.memory_space<vmem>>, vector<32x128xbf16>
    %cst = arith.constant dense<0.000000e+00> : vector<8x128xf32>
    %3 = tpu.matmul %1, %2, %cst {dimension_numbers = #tpu.dot_dimension_numbers<[1], [0], [0], [1], [0, 0, 1, 1], [], []>} : vector<8x32xbf16>, vector<32x128xbf16>, vector<8x128xf32> -> vector<8x128xf32>
    %4 = vector.extract_strided_slice %3 {offsets = [0, 0], sizes = [8, 8], strides = [1, 1]} : vector<8x128xf32> to vector<8x8xf32>
    %5 = vector.shape_cast %4 : vector<8x8xf32> to vector<1x8x8xf32>
    %6 = vector.extract_strided_slice %3 {offsets = [0, 8], sizes = [8, 8], strides = [1, 1]} : vector<8x128xf32> to vector<8x8xf32>
    %7 = vector.shape_cast %6 : vector<8x8xf32> to vector<1x8x8xf32>
    %8 = vector.extract_strided_slice %3 {offsets = [0, 16], sizes = [8, 4], strides = [1, 1]} : vector<8x128xf32> to vector<8x4xf32>
    %9 = vector.shape_cast %8 : vector<8x4xf32> to vector<1x8x4xf32>
    %10 = arith.truncf %7 : vector<1x8x8xf32> to vector<1x8x8xbf16>
    %11 = arith.truncf %5 : vector<1x8x8xf32> to vector<1x8x8xbf16>
    %cst_4 = arith.constant dense<0.000000e+00> : vector<1x8x8xf32>
    %12 = tpu.matmul %10, %11, %cst_4 {dimension_numbers = #tpu.dot_dimension_numbers<[2], [2], [1], [1], [0, 0, 0, 1, 1, 1], [0], [0]>} : vector<1x8x8xbf16>, vector<1x8x8xbf16>, vector<1x8x8xf32> -> vector<1x8x8xf32>
    %cst_5 = arith.constant dense<0xFF800000> : vector<1x8xf32>
    %13 = vector.multi_reduction <maximumf>, %12, %cst_5 [2] : vector<1x8x8xf32> to vector<1x8xf32>
    %14 = vector.shape_cast %13 : vector<1x8xf32> to vector<1x8x1xf32>
    %15 = vector.broadcast %14 : vector<1x8x1xf32> to vector<1x8x8xf32>
    %16 = arith.subf %12, %15 : vector<1x8x8xf32>
    %17 = math.exp %16 : vector<1x8x8xf32>
    %cst_6 = arith.constant dense<0.000000e+00> : vector<1x8xf32>
    %18 = vector.multi_reduction <add>, %17, %cst_6 [2] : vector<1x8x8xf32> to vector<1x8xf32>
    %19 = vector.shape_cast %18 : vector<1x8xf32> to vector<1x8x1xf32>
    %20 = vector.broadcast %19 : vector<1x8x1xf32> to vector<1x8x8xf32>
    %21 = arith.divf %17, %20 : vector<1x8x8xf32>
    %22 = arith.truncf %21 : vector<1x8x8xf32> to vector<1x8x8xbf16>
    %23 = arith.truncf %9 : vector<1x8x4xf32> to vector<1x8x4xbf16>
    %cst_7 = arith.constant dense<0.000000e+00> : vector<1x8x4xf32>
    %24 = tpu.matmul %22, %23, %cst_7 {dimension_numbers = #tpu.dot_dimension_numbers<[2], [1], [1], [2], [0, 0, 0, 1, 1, 2], [0], [0]>} : vector<1x8x8xbf16>, vector<1x8x4xbf16>, vector<1x8x4xf32> -> vector<1x8x4xf32>
    %c0_8 = arith.constant 0 : index
    %c0_9 = arith.constant 0 : index
    %c0_10 = arith.constant 0 : index
    %25 = vector.load %arg3[%c0_8, %c0_9, %c0_10] : memref<1x8x4xf32, #tpu.memory_space<vmem>>, vector<1x8x4xf32>
    tpu.vector_store %arg3[%c0_8, %c0_9, %c0_10], %24 {strides = array<i32>} : memref<1x8x4xf32, #tpu.memory_space<vmem>>, vector<1x8x4xf32>,
    return
  }
  func.func @transform_0(%arg0: i32) -> (i32, i32, i32) {
    %c0_i32 = arith.constant 0 : i32
    %c0_i32_0 = arith.constant 0 : i32
    %c0_i32_1 = arith.constant 0 : i32
    return %arg0, %c0_i32, %c0_i32_0 : i32, i32, i32
  }
  func.func @transform_1(%arg0: i32) -> (i32, i32) {
    %c0_i32 = arith.constant 0 : i32
    %c0_i32_0 = arith.constant 0 : i32
    %c0_i32_1 = arith.constant 0 : i32
    return %c0_i32, %c0_i32_0 : i32, i32
  }
  func.func @transform_2(%arg0: i32) -> (i32, i32, i32) {
    %c0_i32 = arith.constant 0 : i32
    %c0_i32_0 = arith.constant 0 : i32
    %c0_i32_1 = arith.constant 0 : i32
    return %arg0, %c0_i32, %c0_i32_0 : i32, i32, i32
  }
}

</mosaic_0001>

<bundles_post_ra>
// kernel: tpu_custom_call.1
= control target key start
LH: loop header
LB: loop body
LE: loop exit
PB: predicated region body
PF: predicated region fallthrough
CT: control target
= control target key end

     0   :  { %7 = vsyncpa [#allocation3], 0  ;;  %s796_s0 = inlined_call_operand.hbm [shape: bf16[2,8,32], index: 0, kind: input, shape index: {}]   ;;  %s797_s1 = inlined_call_operand.hbm [shape: bf16[32,128], index: 1, kind: input, shape index: {}]   ;;  %s798_s2 = inlined_call_operand.vmem [shape: f32[2,8,4], index: 2, kind: output, shape index: {}]  }
   0x1   :  { %9 = vsyncpa [#allocation3 + $0x1], 0 }
   0x2   :  { %10 = vsyncpa [#allocation5], 0  ;;  %s652_s9 = smov 0   ;;  %s654_s10 = smov 0  }
   0x3   :  { %s656_s11 = smov 0   ;;  %s658_s12 = smov 0  }
   0x4 LB: > { %s671_s13 = sadd.s32 4294967295, %s627_s12   ;;  %p36_p0 = scmp.ne.s32.totalorder %s619_s10, %s615_s9  ;;  %s627_s12 = sphi %s658_s12, %s813_s12   ;;  %s623_s11 = sphi %s656_s11, %s812_s11   ;;  %s619_s10 = sphi %s654_s10, %s811_s10   ;;  %s615_s9 = sphi %s652_s9, %s810_s9  }
   0x5   : > { %p799_p1 = scmp.eq.s32.totalorder %s671_s13, 0  ;;  %p426_p2 = scmp.ge.s32.totalorder %s627_s12, 1 }
   0x6   : > { %p94_p3 = scmp.lt.s32.totalorder %s627_s12, 3  ;;  %s629_s16 = smov [#allocation4]  }
   0x7   : > { %p679_p4 = por %p799_p1, %p36_p0  ;;  %s106_s17 = sshll.u32 %s629_s16, 4  ;;  %s107_s17 = int_to_ptr.vmem [resolvable:$true] %s106_s17 }
   0x8   : > { %p683_p5 = pnand %p426_p2, %p94_p3  ;;  %s696_s19 = sadd.s32 1, %s627_s12  }
   0x9   : > { %s802_s14 = scalar_select %p679_p4, 1, 0 }
   0xa   : > { %s803_s15 = scalar_select %p683_p5, 1, 0 }
   0xb   : > { %p475_p6 = pneg %p683_p5  ;;  %s23_s20 = sadd.s32 1, %s623_s11 }
   0xc   : > { %s20_s21 = ssub.s32 %s627_s12, %s696_s19  ;;  %s531_s24 = scalar_lea.hbm %s797_s1, 256 }
   0xd   : > { %p691_p7 = pnand %p475_p6, %p799_p1  ;;  %p532_p8 = scmp.ne.s32.totalorder %s797_s1, %s531_s24 }
   0xe   : > { %p538_p12 = scmp.lt.u32.totalorder %s531_s24, %s797_s1 }
   0xf   : > { %p533_p9 = pneg %p691_p7 }
  0x11   : > { %p534_p10 = pnand %p533_p9, %p532_p8 }
  0x13   : > { %p535_p11 = pneg %p534_p10 }
  0x15   : > { %p540_p13 = pnand %p538_p12, %p535_p11 }
  0x17   : > { %543 = shalt.err (!%p540_p13)
}
  0x18   : > { %s544_s29 = scalar_lea.vmem %s107_s17, 256  ;;  %p552_p6 = scmp.lt.s32.totalorder %s107_s17, %s107_s17 }
  0x19   : > { %p545_p0 = scmp.ne.s32.totalorder %s107_s17, %s544_s29  ;;  %p553_p1 = scmp.lt.s32.totalorder %s544_s29, %s544_s29 }
  0x1b   : > { %p547_p2 = pnand %p545_p0, %p533_p9  ;;  %p554_p4 = por %p553_p1, %p552_p6 }
  0x1d   : > { %p548_p3 = pneg %p547_p2 }
  0x1f   : > { %p555_p5 = pnand %p554_p4, %p548_p3 }
  0x21   : > { %558 = shalt.err (!%p555_p5)
}
  0x22   : > { %s630_s30 = smov 64   ;;  %s631_s3 = smov 4  }
  0x23   : > { %478 = dma.hbm_to_vmem [thread:$0]  (!%p691_p7), %s797_s1, 256, %s107_s17, [#allocation5], %s630_s30, %s630_s30, %s631_s3  }
  0x24   : > { %p21_p8 = scmp.eq.s32.totalorder %s20_s21, 0  ;;  %p30_p9 = scmp.ne.s32.totalorder %s623_s11, %s619_s10 }
  0x25   : > { %p31_p1 = scmp.eq.s32.totalorder %s627_s12, 0  ;;  %p484_p4 = scmp.lt.s32.totalorder %s627_s12, 2 }
  0x26   : > { %s722_s6 = scalar_select %p21_p8, %s623_s11, %s23_s20  }
  0x27   : > { %p32_p5 = por %p31_p1, %p30_p9  ;;  %s120_s7 = sand.u32 1, %s623_s11  }
  0x28   : > { %s429_s8 = sshll.u32 %s120_s7, 2  ;;  %s430_s9 = sshll.u32 %s627_s12, 6 }
  0x29   : > { %s729_s23 = scalar_lea.hbm %s796_s0, %s430_s9  ;;  %s124_s17 = scalar_lea.vmem [#allocation2], %s429_s8 }
  0x2a   : > { %s131_s18 = sshll.u32 %s124_s17, 4  ;;  %p733_p7 = pnand %p484_p4, %p32_p5  ;;  %s731_s18 = int_to_ptr.vmem [resolvable:$true] %s131_s18 }
  0x2b   : > { %s121_s12 = scalar_lea.sflag [#allocation3], %s120_s7  ;;  %s559_s21 = scalar_lea.hbm %s729_s23, 64 }
  0x2c   : > { %p560_p10 = scmp.ne.s32.totalorder %s729_s23, %s559_s21  ;;  %p561_p11 = pneg %p733_p7 }
  0x2d   : > { %s564_s26 = scalar_lea.hbm %s796_s0, 128  ;;  %p565_p0 = scmp.lt.u32.totalorder %s729_s23, %s796_s0 }
  0x2e   : > { %p562_p12 = pnand %p561_p11, %p560_p10  ;;  %p566_p2 = scmp.lt.u32.totalorder %s564_s26, %s559_s21 }
  0x2f   : > { %p568_p6 = scmp.lt.u32.totalorder %s559_s21, %s729_s23 }
  0x30   : > { %p563_p13 = pneg %p562_p12  ;;  %p567_p3 = por %p566_p2, %p565_p0 }
  0x32   : > { %p569_p8 = por %p568_p6, %p567_p3 }
  0x34   : > { %p570_p9 = pnand %p569_p8, %p563_p13 }
  0x36   : > { %573 = shalt.err (!%p570_p9)
}
  0x37   : > { %s574_s29 = scalar_lea.vmem %s731_s18, 64  ;;  %s632_s30 = smov [#allocation2]  }
  0x38   : > { %p575_p1 = scmp.ne.s32.totalorder %s731_s18, %s574_s29  ;;  %s579_s3 = sshll.u32 %s632_s30, 4  ;;  %s580_s3 = int_to_ptr.vmem [resolvable:$false] %s579_s3 }
  0x39   : > { %s581_s4 = scalar_lea.vmem %s580_s3, 128  ;;  %p582_p10 = scmp.lt.s32.totalorder %s731_s18, %s580_s3 }
  0x3a   : > { %p577_p4 = pnand %p575_p1, %p561_p11  ;;  %p583_p12 = scmp.lt.s32.totalorder %s581_s4, %s574_s29 }
  0x3c   : > { %p578_p5 = pneg %p577_p4  ;;  %p584_p0 = por %p583_p12, %p582_p10 }
  0x3e   : > { %p585_p2 = pnand %p584_p0, %p578_p5 }
  0x40   : > { %588 = shalt.err (!%p585_p2)
}
  0x41   : > { %482 = dma.hbm_to_vmem [thread:$0]  (!%p733_p7), %s729_s23, 64, %s731_s18, %s121_s12  }
  0x42   : > { %p806_p13 = scmp.ne.s32.totalorder %s803_s15, 0 }
  0x43   : > { %s142_s5 = sand.u32 (!%p806_p13), 1, %s619_s10   ;;  %p807_p11 = scmp.ne.s32.totalorder (!%p806_p13), %s802_s14, 0 }
  0x44   : > { %140 = sbr.rel (%p806_p13) target bundleno = 1161 (0x489), region = 28  ;;  %s432_s7 = sshll.u32 (!%p806_p13), %s142_s5, 2 }
  0x45   : > { %s143_s8 = scalar_lea.sflag (!%p806_p13), [#allocation3], %s142_s5  ;;  %s146_s9 = scalar_lea.vmem (!%p806_p13), [#allocation2], %s432_s7 }
  0x4b   : > { %606 = dma.done.wait (%p807_p11), %s143_s8, 64  }
  0x4c   : > { %608 = vsyncadd (%p807_p11), %s143_s8, 4294967232  ;;  %p808_p3 = scmp.eq.s32.totalorder %s671_s13, 0 }
  0x4e   : > { %610 = dma.done.wait (%p808_p3), [#allocation5], 256   ;;  %p809_p6 = pmov %p808_p3 }
  0x4f   : > { %v633_v0 = vmov 0.0   ;;  %vm634_vm0 = vmmov 0   ;;  %v525_v1 = vld [vmem:[#allocation4] sm:$0xff]   ;;  %v526_v2 = vld [vmem:[#allocation4 + $0x8] sm:$0xff]   ;;  %v175_v3 = vld [vmem:[%s146_s9] sm:$0xf] }
  0x50   : > { %612 = vsyncadd (%p809_p6), [#allocation5], 4294967040  ;;  %449 = vmatprep.subr.bf16.mxu0 %v633_v0  ;;  %453 = vmatprep.mubr.msk.bf16.mxu0 %vm634_vm0, %v633_v0  ;;  %vm192_vm1 = vcmask 261120   ;;  %vm240_vm2 = vcmask 64512   ;;  %s635_s14 = smov 120   ;;  %s636_s15 = smov 112  }
  0x51   : > { %457 = vmatprep.subr.bf16.mxu1 %v633_v0  ;;  %459 = vmatprep.mubr.msk.bf16.mxu1 %vm634_vm0, %v633_v0  ;;  %vm304_vm3 = vcmask 1043456   ;;  %p170_p7 = scmp.lt.s32.totalorder %s671_s13, 1  ;;  %vm348_vm4 = vcmask 31744  }
  0x52   : > { %450 = vmatpush3.bf16.msra.mxu0 %v525_v1 }
  0x53   : > { %451 = vmatprep.subr.bf16.mxu0 %v633_v0  ;;  %s815_s13 = smov (!%p170_p7, %s671_s13), 1 }
  0x54   : > { %s434_s16 = sshll.u32 %s815_s13, 3 }
  0x55   : > { %s173_s17 = scalar_lea.vmem %s798_s2, %s434_s16 }
  0x56   : > { %452 = vmatpush3.bf16.msra.mxu0 %v526_v2 }
  0x57   : > { %463 = vmatprep.subr.bf16.mxu0 %v633_v0 }
  0x59   : > { %454 = vmatmul.mubr.msk.bf16.vlgmr.msra.gmra.mrb[0].mxu0 %vm192_vm1, %v175_v3 }
  0x5a   : > { %465 = vmatprep.mubr.msk.bf16.mxu0 %vm634_vm0, %v633_v0 }
 0x12c   : > { %v230_v4 = vpop.f32.mrb[0].mxu0 }
 0x12d   : > { %v236_v5 = vpack.c.bf16 %v230_v4, %v230_v4  ;;  %v455_v6 = vpop.f32.mrb[1].mxu0 }
 0x12e   : > { %v233_v7 = vpop.f32.mrb[2].mxu0 }
 0x12f   : > { %238 = vrot.lane.b32.xlu0 %v236_v5, %s635_s14  ;;  %v456_v8 = vpop.f32.mrb[3].mxu0  ;;  %v245_v9 = vsel %vm240_vm2, %v236_v5, 0 }
 0x130   : > { %458 = vmatpush3.bf16.xpose.msra.mxu1 %v245_v9 }
 0x1a1   : > { %v239_v10 = vpop.permute.xlu0 %238 }
 0x1a2   : > { %460 = vmatmul.mubr.msk.bf16.vlgmr.msra.gmra.mrb[0].mxu1 %vm240_vm2, %v239_v10 }
 0x275   : > { %v281_v11 = vpop.f32.mrb[0].mxu1 }
 0x276   : > { %v461_v12 = vpop.f32.mrb[1].mxu1  ;;  %v287_v13 = vsel %vm240_vm2, %v281_v11, -inf }
 0x277   : > { %288 = vmax.xlane.f32.xlu0 %v287_v13  ;;  %v284_v14 = vpop.f32.mrb[2].mxu1 }
 0x278   : > { %v462_v15 = vpop.f32.mrb[3].mxu1 }
 0x304   : > { %v289_v16 = vpop.xlane.xlu0 %288 }
 0x305   : > { %v290_v17 = vsub.f32 %v281_v11, %v289_v16 }
 0x307   : > { %v291_v18 = vmul.f32 1.442695, %v290_v17 }
 0x309   : > { %527 = vpow2.f32 %v291_v18 }
 0x313   : > { %v528_v19 = vpop.eup %527 }
 0x314   : > { %v293_v20 = vsel %vm240_vm2, %v528_v19, 0.0 }
 0x315   : > { %294 = vadd.xlane.f32.xlu1 %v293_v20 }
 0x326   : > { %299 = vrot.lane.b32.xlu1 %v236_v5, %s636_s15 }
 0x3a2   : > { %v295_v21 = vpop.xlane.xlu1 %294 }
 0x3a3   : > { %529 = vrcp.f32 %v295_v21 }
 0x3a6   : > { %v300_v22 = vpop.permute.xlu1 %299 }
 0x3a7   : > { %v306_v23 = vsel %vm304_vm3, %v300_v22, 0 }
 0x3a8   : > { %464 = vmatpush3.bf16.msra.mxu0 %v306_v23 }
 0x3ad   : > { %v530_v24 = vpop.eup %529 }
 0x3ae   : > { %v297_v25 = vmul.f32 %v530_v24, %v528_v19 }
 0x3b0   : > { %v298_v26 = vpack.c.bf16 %v297_v25, %v297_v25 }
 0x3b2   : > { %466 = vmatmul.mubr.msk.bf16.vlgmr.msra.gmra.mrb[4].mxu0 %vm240_vm2, %v298_v26 }
 0x485   : > { %v342_v27 = vpop.f32.mrb[4].mxu0 }
 0x486   : > { %349 = vst.msk [vmem:[%s173_s17] sm:$0xff] %vm348_vm4, %v342_v27  ;;  %v467_v28 = vpop.f32.mrb[5].mxu0 }
 0x487   : > { %v345_v29 = vpop.f32.mrb[6].mxu0 }
 0x488   : > { %v468_v30 = vpop.f32.mrb[7].mxu0 }
 0x489 PF: > { %p13_p8 = scmp.ge.s32.totalorder %s696_s19, 4   ;;  %s810_s9 = smov %s619_s10 }
 0x48a   : > { %s811_s10 = smov %s623_s11  ;;  %s812_s11 = smov %s722_s6 }
 0x48b   : > { %s813_s12 = smov %s696_s19  ;;  %15 = sbr.rel (!%p13_p8) target bundleno = 4 (0x4), region = 72 }
 0x492   :  { %369 = vsyncpa [#allocation3], 1 }
 0x493   :  { %371 = vsyncpa [#allocation3 + $0x1], 1 }
 0x494   :  { %372 = vsyncpa [#allocation5], 1 }

</bundles_post_ra>
